<compile_context>
chip_gen: v6e
topology: v6e:2x2x1
jax: 0.10.0
libtpu: 0.0.40
codegen_flags: <defaults>
</compile_context>

<pallas_src>
import functools

import jax
import jax.numpy as jnp
from jax.experimental import pallas as pl
from jax.experimental.pallas import tpu as pltpu

INPUT_DIM = 21 * 3            # 63
HIDDEN_DIMS = [500, 300, 100]
OUTPUT_DIM = 22               # len(newTranslate)

# padded feature widths: input -> 64 (full-dim block is legal), the rest ->
# multiples of 128 so every matmul / store is lane-dense.
PAD_DIMS = [64, 512, 384, 128, 128]   # in, h0, h1, h2, out
REAL_DIMS = [INPUT_DIM] + HIDDEN_DIMS + [OUTPUT_DIM]

MAX_TILE_B = 2048


def _cdiv(a, b):
    return (a + b - 1) // b


def _round_up(x, m):
    return ((x + m - 1) // m) * m


def _bf16_elementwise_ok():
    """bf16 VPU/EUP only on v6e / v7x; keep f32 elementwise on v5e & older."""
    try:
        kind = jax.devices()[0].device_kind.lower()
    except Exception:
        return False
    return ("v6" in kind) or ("v7" in kind)


def mlp_kernel(x_ref,
               w0_ref, b0_ref,
               w1_ref, b1_ref,
               w2_ref, b2_ref,
               w3_ref, b3_ref,
               o_ref, *, inter_dtype):
    # x tile: (TILE_B, 64) bf16.  Weights: bf16 (in_pad, out_pad).
    # Biases: layers 0-2 in inter_dtype (bf16 on v6e/v7x, f32 on v5e),
    #         layer 3 in f32.
    h = x_ref[...]                                            # bf16

    # layers 0..2: MXU matmul + bias + ReLU
    for w_ref, b_ref in ((w0_ref, b0_ref), (w1_ref, b1_ref), (w2_ref, b2_ref)):
        h = jnp.dot(h, w_ref[...],
                    preferred_element_type=inter_dtype) + b_ref[...]
        h = jnp.maximum(h, 0.0)
        h = h.astype(jnp.bfloat16)        # no-op when inter_dtype is bf16

    # layer 3: f32 accumulation for the sigmoid
    logits = jnp.dot(h, w3_ref[...],
                     preferred_element_type=jnp.float32) + b3_ref[...]

    # sigmoid = 1 / (1 + exp(-x)); exp + approx reciprocal ride the EUP slot
    o_ref[...] = pl.reciprocal(1.0 + jnp.exp(-logits), approx=True)


@functools.partial(jax.jit, static_argnames=("max_tile_b",))
def mlp_forward(x, params, max_tile_b=MAX_TILE_B):
    """x: (B, 21, 3) or (B, 63). params: list of (w_pad_bf16, b_pad_f32).

    Returns (B, 22) sigmoid outputs (float32).
    """
    x2d = x.reshape(x.shape[0], -1)                           # torch.flatten(x, 1)
    B = x2d.shape[0]

    # --- batch tiling: amortize per-step overhead, avoid padding waste,
    #     keep >= 2 grid steps for megacore when the batch is big enough.
    min_steps = 2 if B >= 512 else 1
    target_steps = max(min_steps, _cdiv(B, max_tile_b))
    tile_b = min(max_tile_b, _round_up(_cdiv(B, target_steps), 8))
    padded_b = _round_up(B, tile_b)
    grid_b = padded_b // tile_b

    inter_dtype = jnp.bfloat16 if _bf16_elementwise_ok() else jnp.float32

    # input: flatten, zero-pad batch -> padded_b and features 63 -> 64, bf16
    x_pad = jnp.zeros((padded_b, PAD_DIMS[0]), jnp.bfloat16)
    x_pad = x_pad.at[:B, :INPUT_DIM].set(x2d.astype(jnp.bfloat16))

    # x / out: blocked along batch; weights & biases: resident (constant map)
    flat_params = []
    in_specs = [pl.BlockSpec((tile_b, PAD_DIMS[0]), lambda i: (i, 0))]
    n_layers = len(params)
    for li, (w, b) in enumerate(params):
        b_use = b if li == n_layers - 1 else b.astype(inter_dtype)
        flat_params += [w, b_use]
        in_specs.append(pl.BlockSpec(w.shape, lambda i: (0, 0)))
        in_specs.append(pl.BlockSpec(b_use.shape, lambda i: (0, 0)))
    out_spec = pl.BlockSpec((tile_b, PAD_DIMS[-1]), lambda i: (i, 0))

    # scoped-VMEM budget: resident weights + double-buffered x/out tiles +
    # generous f32 intermediates + margin (v5e default of 16 MiB is too small
    # at large tiles; clamp below v7x's 64 MiB physical VMEM).
    weight_bytes = sum(w.size * w.dtype.itemsize + b.size * 4 for w, b in params)
    tile_io_bytes = 2 * (tile_b * PAD_DIMS[0] * 2 + tile_b * PAD_DIMS[-1] * 4)
    inter_bytes = tile_b * sum(PAD_DIMS[1:]) * 4
    vmem_limit = min(max(int(weight_bytes + tile_io_bytes + inter_bytes)
                         + (8 << 20), 32 << 20), 56 << 20)

    matmul_flops = 2 * padded_b * sum(PAD_DIMS[i] * PAD_DIMS[i + 1]
                                      for i in range(len(PAD_DIMS) - 1))
    bytes_accessed = (x_pad.size * 2
                      + sum(w.size * 2 + b.size * 4 for w, b in params)
                      + padded_b * PAD_DIMS[-1] * 4)

    out_pad = pl.pallas_call(
        functools.partial(mlp_kernel, inter_dtype=inter_dtype),
        grid=(grid_b,),
        in_specs=in_specs,
        out_specs=out_spec,
        out_shape=jax.ShapeDtypeStruct((padded_b, PAD_DIMS[-1]), jnp.float32),
        compiler_params=pltpu.CompilerParams(
            dimension_semantics=("parallel",),
            vmem_limit_bytes=vmem_limit),
        cost_estimate=pl.CostEstimate(
            flops=matmul_flops,
            transcendentals=2 * padded_b * PAD_DIMS[-1],   # exp + reciprocal
            bytes_accessed=int(bytes_accessed)),
    )(x_pad, *flat_params)

    return out_pad[:B, :OUTPUT_DIM]


def init_params(key):
    """PyTorch-style Linear init U(-1/sqrt(fan_in), 1/sqrt(fan_in)), stored
    transposed (in, out), zero-padded to lane-aligned widths, weights bf16,
    biases f32 (cast per-layer inside the wrapper)."""
    params = []
    for i in range(len(REAL_DIMS) - 1):
        fan_in, fan_out = REAL_DIMS[i], REAL_DIMS[i + 1]
        pad_in, pad_out = PAD_DIMS[i], PAD_DIMS[i + 1]
        key, kw, kb = jax.random.split(key, 3)
        bound = 1.0 / (fan_in ** 0.5)
        w = jax.random.uniform(kw, (fan_in, fan_out), jnp.float32, -bound, bound)
        b = jax.random.uniform(kb, (fan_out,), jnp.float32, -bound, bound)

        w_pad = jnp.zeros((pad_in, pad_out), jnp.float32).at[:fan_in, :fan_out].set(w)
        b_pad = jnp.zeros((1, pad_out), jnp.float32).at[0, :fan_out].set(b)
        params.append((w_pad.astype(jnp.bfloat16), b_pad))
    return params


if __name__ == "__main__":
    key = jax.random.PRNGKey(0)
    key, kx = jax.random.split(key)

    batch = 8
    x = jax.random.normal(kx, (batch, 21, 3), dtype=jnp.float32)

    params = init_params(key)

    out = mlp_forward(x, params)
    out = jax.block_until_ready(out)

    # sanity: sigmoid output in [0, 1], finite, right shape
    assert out.shape == (batch, OUTPUT_DIM)
    assert bool(jnp.all(jnp.isfinite(out)))
    assert bool(jnp.all((out >= 0.0) & (out <= 1.0)))

    print("KERNEL_OK")
</pallas_src>

<mosaic_0001>
module attributes {stable_mosaic.version = 11 : i64} {
  func.func @mlp_kernel(%arg0: i32, %arg1: memref<8x64xbf16, #tpu.memory_space<vmem>>, %arg2: memref<64x512xbf16, #tpu.memory_space<vmem>>, %arg3: memref<1x512xf32, #tpu.memory_space<vmem>>, %arg4: memref<512x384xbf16, #tpu.memory_space<vmem>>, %arg5: memref<1x384xf32, #tpu.memory_space<vmem>>, %arg6: memref<384x128xbf16, #tpu.memory_space<vmem>>, %arg7: memref<1x128xf32, #tpu.memory_space<vmem>>, %arg8: memref<128x128xbf16, #tpu.memory_space<vmem>>, %arg9: memref<1x128xf32, #tpu.memory_space<vmem>>, %arg10: memref<8x128xf32, #tpu.memory_space<vmem>>) attributes {dimension_semantics = [#tpu.dimension_semantics<parallel>], iteration_bounds = array<i64: 1>, scalar_prefetch = 0 : i64, scratch_operands = 0 : i64, tpu.core_type = #tpu.core_type<tc>, window_params = [{transform_indices = @transform_0, window_bounds = array<i64: 8, 64>}, {pipeline_mode = #tpu.pipeline_mode<synchronous>, transform_indices = @transform_1, window_bounds = array<i64: 64, 512>}, {pipeline_mode = #tpu.pipeline_mode<synchronous>, transform_indices = @transform_2, window_bounds = array<i64: 1, 512>}, {pipeline_mode = #tpu.pipeline_mode<synchronous>, transform_indices = @transform_3, window_bounds = array<i64: 512, 384>}, {pipeline_mode = #tpu.pipeline_mode<synchronous>, transform_indices = @transform_4, window_bounds = array<i64: 1, 384>}, {pipeline_mode = #tpu.pipeline_mode<synchronous>, transform_indices = @transform_5, window_bounds = array<i64: 384, 128>}, {pipeline_mode = #tpu.pipeline_mode<synchronous>, transform_indices = @transform_6, window_bounds = array<i64: 1, 128>}, {pipeline_mode = #tpu.pipeline_mode<synchronous>, transform_indices = @transform_7, window_bounds = array<i64: 128, 128>}, {pipeline_mode = #tpu.pipeline_mode<synchronous>, transform_indices = @transform_8, window_bounds = array<i64: 1, 128>}, {transform_indices = @transform_9, window_bounds = array<i64: 8, 128>}]} {
    %c0 = arith.constant 0 : index
    %c0_0 = arith.constant 0 : index
    %0 = vector.load %arg1[%c0, %c0_0] : memref<8x64xbf16, #tpu.memory_space<vmem>>, vector<8x64xbf16>
    %c0_1 = arith.constant 0 : index
    %c0_2 = arith.constant 0 : index
    %1 = vector.load %arg2[%c0_1, %c0_2] : memref<64x512xbf16, #tpu.memory_space<vmem>>, vector<64x512xbf16>
    %cst = arith.constant dense<0.000000e+00> : vector<8x512xf32>
    %2 = tpu.matmul %0, %1, %cst {dimension_numbers = #tpu.dot_dimension_numbers<[1], [0], [0], [1], [0, 0, 1, 1], [], []>} : vector<8x64xbf16>, vector<64x512xbf16>, vector<8x512xf32> -> vector<8x512xf32>
    %c0_3 = arith.constant 0 : index
    %c0_4 = arith.constant 0 : index
    %3 = vector.load %arg3[%c0_3, %c0_4] : memref<1x512xf32, #tpu.memory_space<vmem>>, vector<1x512xf32>
    %4 = vector.broadcast %3 : vector<1x512xf32> to vector<8x512xf32>
    %5 = arith.addf %2, %4 : vector<8x512xf32>
    %cst_5 = arith.constant 0.000000e+00 : f32
    %6 = vector.broadcast %cst_5 : f32 to vector<8x512xf32>
    %7 = arith.maximumf %5, %6 : vector<8x512xf32>
    %8 = arith.truncf %7 : vector<8x512xf32> to vector<8x512xbf16>
    %c0_6 = arith.constant 0 : index
    %c0_7 = arith.constant 0 : index
    %9 = vector.load %arg4[%c0_6, %c0_7] : memref<512x384xbf16, #tpu.memory_space<vmem>>, vector<512x384xbf16>
    %cst_8 = arith.constant dense<0.000000e+00> : vector<8x384xf32>
    %10 = tpu.matmul %8, %9, %cst_8 {dimension_numbers = #tpu.dot_dimension_numbers<[1], [0], [0], [1], [0, 0, 1, 1], [], []>} : vector<8x512xbf16>, vector<512x384xbf16>, vector<8x384xf32> -> vector<8x384xf32>
    %c0_9 = arith.constant 0 : index
    %c0_10 = arith.constant 0 : index
    %11 = vector.load %arg5[%c0_9, %c0_10] : memref<1x384xf32, #tpu.memory_space<vmem>>, vector<1x384xf32>
    %12 = vector.broadcast %11 : vector<1x384xf32> to vector<8x384xf32>
    %13 = arith.addf %10, %12 : vector<8x384xf32>
    %cst_11 = arith.constant 0.000000e+00 : f32
    %14 = vector.broadcast %cst_11 : f32 to vector<8x384xf32>
    %15 = arith.maximumf %13, %14 : vector<8x384xf32>
    %16 = arith.truncf %15 : vector<8x384xf32> to vector<8x384xbf16>
    %c0_12 = arith.constant 0 : index
    %c0_13 = arith.constant 0 : index
    %17 = vector.load %arg6[%c0_12, %c0_13] : memref<384x128xbf16, #tpu.memory_space<vmem>>, vector<384x128xbf16>
    %cst_14 = arith.constant dense<0.000000e+00> : vector<8x128xf32>
    %18 = tpu.matmul %16, %17, %cst_14 {dimension_numbers = #tpu.dot_dimension_numbers<[1], [0], [0], [1], [0, 0, 1, 1], [], []>} : vector<8x384xbf16>, vector<384x128xbf16>, vector<8x128xf32> -> vector<8x128xf32>
    %c0_15 = arith.constant 0 : index
    %c0_16 = arith.constant 0 : index
    %19 = vector.load %arg7[%c0_15, %c0_16] : memref<1x128xf32, #tpu.memory_space<vmem>>, vector<1x128xf32>
    %20 = vector.broadcast %19 : vector<1x128xf32> to vector<8x128xf32>
    %21 = arith.addf %18, %20 : vector<8x128xf32>
    %cst_17 = arith.constant 0.000000e+00 : f32
    %22 = vector.broadcast %cst_17 : f32 to vector<8x128xf32>
    %23 = arith.maximumf %21, %22 : vector<8x128xf32>
    %24 = arith.truncf %23 : vector<8x128xf32> to vector<8x128xbf16>
    %c0_18 = arith.constant 0 : index
    %c0_19 = arith.constant 0 : index
    %25 = vector.load %arg8[%c0_18, %c0_19] : memref<128x128xbf16, #tpu.memory_space<vmem>>, vector<128x128xbf16>
    %cst_20 = arith.constant dense<0.000000e+00> : vector<8x128xf32>
    %26 = tpu.matmul %24, %25, %cst_20 {dimension_numbers = #tpu.dot_dimension_numbers<[1], [0], [0], [1], [0, 0, 1, 1], [], []>} : vector<8x128xbf16>, vector<128x128xbf16>, vector<8x128xf32> -> vector<8x128xf32>
    %c0_21 = arith.constant 0 : index
    %c0_22 = arith.constant 0 : index
    %27 = vector.load %arg9[%c0_21, %c0_22] : memref<1x128xf32, #tpu.memory_space<vmem>>, vector<1x128xf32>
    %28 = vector.broadcast %27 : vector<1x128xf32> to vector<8x128xf32>
    %29 = arith.addf %26, %28 : vector<8x128xf32>
    %cst_23 = arith.constant 0.000000e+00 : f32
    %30 = vector.broadcast %cst_23 : f32 to vector<8x128xf32>
    %31 = arith.subf %30, %29 : vector<8x128xf32>
    %32 = math.exp %31 : vector<8x128xf32>
    %cst_24 = arith.constant 1.000000e+00 : f32
    %33 = vector.broadcast %cst_24 : f32 to vector<8x128xf32>
    %34 = arith.addf %33, %32 : vector<8x128xf32>
    %35 = tpu.reciprocal %34 {approx = true} : vector<8x128xf32> -> vector<8x128xf32>
    %c0_25 = arith.constant 0 : index
    %c0_26 = arith.constant 0 : index
    %36 = vector.load %arg10[%c0_25, %c0_26] : memref<8x128xf32, #tpu.memory_space<vmem>>, vector<8x128xf32>
    tpu.vector_store %arg10[%c0_25, %c0_26], %35 {strides = array<i32>} : memref<8x128xf32, #tpu.memory_space<vmem>>, vector<8x128xf32>,
    return
  }
  func.func @transform_0(%arg0: i32) -> (i32, i32) {
    %c0_i32 = arith.constant 0 : i32
    %c0_i32_0 = arith.constant 0 : i32
    return %arg0, %c0_i32 : i32, i32
  }
  func.func @transform_1(%arg0: i32) -> (i32, i32) {
    %c0_i32 = arith.constant 0 : i32
    %c0_i32_0 = arith.constant 0 : i32
    %c0_i32_1 = arith.constant 0 : i32
    return %c0_i32, %c0_i32_0 : i32, i32
  }
  func.func @transform_2(%arg0: i32) -> (i32, i32) {
    %c0_i32 = arith.constant 0 : i32
    %c0_i32_0 = arith.constant 0 : i32
    %c0_i32_1 = arith.constant 0 : i32
    return %c0_i32, %c0_i32_0 : i32, i32
  }
  func.func @transform_3(%arg0: i32) -> (i32, i32) {
    %c0_i32 = arith.constant 0 : i32
    %c0_i32_0 = arith.constant 0 : i32
    %c0_i32_1 = arith.constant 0 : i32
    return %c0_i32, %c0_i32_0 : i32, i32
  }
  func.func @transform_4(%arg0: i32) -> (i32, i32) {
    %c0_i32 = arith.constant 0 : i32
    %c0_i32_0 = arith.constant 0 : i32
    %c0_i32_1 = arith.constant 0 : i32
    return %c0_i32, %c0_i32_0 : i32, i32
  }
  func.func @transform_5(%arg0: i32) -> (i32, i32) {
    %c0_i32 = arith.constant 0 : i32
    %c0_i32_0 = arith.constant 0 : i32
    %c0_i32_1 = arith.constant 0 : i32
    return %c0_i32, %c0_i32_0 : i32, i32
  }
  func.func @transform_6(%arg0: i32) -> (i32, i32) {
    %c0_i32 = arith.constant 0 : i32
    %c0_i32_0 = arith.constant 0 : i32
    %c0_i32_1 = arith.constant 0 : i32
    return %c0_i32, %c0_i32_0 : i32, i32
  }
  func.func @transform_7(%arg0: i32) -> (i32, i32) {
    %c0_i32 = arith.constant 0 : i32
    %c0_i32_0 = arith.constant 0 : i32
    %c0_i32_1 = arith.constant 0 : i32
    return %c0_i32, %c0_i32_0 : i32, i32
  }
  func.func @transform_8(%arg0: i32) -> (i32, i32) {
    %c0_i32 = arith.constant 0 : i32
    %c0_i32_0 = arith.constant 0 : i32
    %c0_i32_1 = arith.constant 0 : i32
    return %c0_i32, %c0_i32_0 : i32, i32
  }
  func.func @transform_9(%arg0: i32) -> (i32, i32) {
    %c0_i32 = arith.constant 0 : i32
    %c0_i32_0 = arith.constant 0 : i32
    return %arg0, %c0_i32 : i32, i32
  }
}

</mosaic_0001>

<bundles_post_ra>
// kernel: mlp_forward.1
= control target key start
LH: loop header
LB: loop body
LE: loop exit
PB: predicated region body
PF: predicated region fallthrough
CT: control target
= control target key end

     0   :  { %14 = vsyncpa [#allocation3], 0  ;;  %s2292_s0 = inlined_call_operand.vmem [shape: bf16[8,64], index: 0, kind: input, shape index: {}]   ;;  %s2293_s1 = inlined_call_operand.hbm [shape: bf16[64,512], index: 1, kind: input, shape index: {}]   ;;  %s2294_s2 = inlined_call_operand.vmem [shape: f32[1,512], index: 2, kind: input, shape index: {}]   ;;  %s2295_s3 = inlined_call_operand.hbm [shape: bf16[512,384], index: 3, kind: input, shape index: {}]   ;;  %s2296_s4 = inlined_call_operand.vmem [shape: f32[1,384], index: 4, kind: input, shape index: {}]   ;;  %s2297_s5 = inlined_call_operand.vmem [shape: bf16[384,128], index: 5, kind: input, shape index: {}]   ;;  %s2298_s6 = inlined_call_operand.vmem [shape: f32[1,128], index: 6, kind: input, shape index: {}]   ;;  %s2299_s7 = inlined_call_operand.hbm [shape: bf16[128,128], index: 7, kind: input, shape index: {}]   ;;  %s2300_s8 = inlined_call_operand.vmem [shape: f32[1,128], index: 8, kind: input, shape index: {}]   ;;  %s2301_s9 = inlined_call_operand.hbm [shape: f32[8,128], index: 9, kind: output, shape index: {}]  }
   0x1   :  { %15 = vsyncpa [#allocation6], 0 }
   0x2   :  { %16 = vsyncpa [#allocation4], 0  ;;  %s2086_s30 = smov [#allocation5]  }
   0x3   :  { %s38_s10 = sshll.u32 %s2086_s30, 4  ;;  %s39_s10 = int_to_ptr.vmem [resolvable:$true] %s38_s10 }
   0x4   :  { %s2008_s11 = scalar_lea.vmem %s39_s10, 12288  ;;  %p2013_p1 = scmp.lt.s32.totalorder %s39_s10, %s39_s10 }
   0x5   :  { %p2009_p0 = scmp.ne.s32.totalorder %s39_s10, %s2008_s11  ;;  %p2014_p2 = scmp.lt.s32.totalorder %s2008_s11, %s2008_s11 }
   0x7   :  { %p2015_p3 = por %p2014_p2, %p2013_p1 }
   0x9   :  { %p2016_p4 = pnand %p2015_p3, %p2009_p0 }
   0xb   :  { %2019 = shalt.err (!%p2016_p4)
}
   0xc   :  { %s2087_s12 = smov 192   ;;  %s2088_s13 = smov 12  }
   0xd   :  { %44 = dma.hbm_to_vmem [thread:$0]  %s2295_s3, 12288, %s39_s10, [#allocation6], %s2087_s12, %s2087_s12, %s2088_s13  }
   0xe   :  { %s2089_s16 = smov [#allocation2]  }
   0xf   :  { %s24_s17 = sshll.u32 %s2089_s16, 4  ;;  %s25_s17 = int_to_ptr.vmem [resolvable:$true] %s24_s17 }
  0x10   :  { %s2028_s18 = scalar_lea.vmem %s25_s17, 2048  ;;  %p2033_p6 = scmp.lt.s32.totalorder %s25_s17, %s25_s17 }
  0x11   :  { %p2029_p5 = scmp.ne.s32.totalorder %s25_s17, %s2028_s18  ;;  %p2034_p7 = scmp.lt.s32.totalorder %s2028_s18, %s2028_s18 }
  0x13   :  { %p2035_p8 = por %p2034_p7, %p2033_p6 }
  0x15   :  { %p2036_p9 = pnand %p2035_p8, %p2029_p5 }
  0x17   :  { %2039 = shalt.err (!%p2036_p9)
}
  0x18   :  { %s2090_s19 = smov 256   ;;  %s2091_s20 = smov 16  }
  0x19   :  { %30 = dma.hbm_to_vmem [thread:$0]  %s2293_s1, 2048, %s25_s17, [#allocation3], %s2090_s19, %s2090_s19, %s2091_s20  }
  0x1a   :  { %s2092_s23 = smov [#allocation7]  }
  0x1b   :  { %s56_s24 = sshll.u32 %s2092_s23, 4  ;;  %s57_s24 = int_to_ptr.vmem [resolvable:$true] %s56_s24 }
  0x1c   :  { %s2048_s3 = scalar_lea.vmem %s57_s24, 1024  ;;  %p2053_p11 = scmp.lt.s32.totalorder %s57_s24, %s57_s24 }
  0x1d   :  { %p2049_p10 = scmp.ne.s32.totalorder %s57_s24, %s2048_s3  ;;  %p2054_p12 = scmp.lt.s32.totalorder %s2048_s3, %s2048_s3 }
  0x1f   :  { %p2055_p13 = por %p2054_p12, %p2053_p11 }
  0x21   :  { %p2056_p0 = pnand %p2055_p13, %p2049_p10 }
  0x23   :  { %2059 = shalt.err (!%p2056_p0)
}
  0x24   :  { %s2093_s25 = smov 64   ;;  %s2094_s26 = smov 4  }
  0x25   :  { %62 = dma.hbm_to_vmem [thread:$0]  %s2299_s7, 1024, %s57_s24, [#allocation6], %s2093_s25, %s2093_s25, %s2094_s26  }
  0x26   :  { %2080 = dma.done.wait [#allocation3], 2048  }
  0x27   :  { %2081 = vsyncadd [#allocation3], 4294965248 }
  0x28   :  { %2082 = dma.done.wait [#allocation6], 13312  }
  0x29   :  { %2083 = vsyncadd [#allocation6], 4294953984  ;;  %v2095_v0 = vmov 0   ;;  %v1812_v1 = vld [vmem:[#allocation2 + $0x64] ss:$16 sps:$4 sm:$0xff]   ;;  %vm194_vm0 = vcmask 523264  }
  0x2a   :  { %230 = vmatprep.mubr.bf16.mxu1 %v2095_v0  ;;  %v1814_v2 = vld [vmem:[#allocation2 + $0x60] ss:$16 sps:$4 sm:$0xff]   ;;  %206 = vmatprep.subr.bf16.mxu1 %v1812_v1  ;;  %v1815_v3 = vld [vmem:[#allocation2 + $0x44] ss:$16 sps:$4 sm:$0xff]   ;;  %v1826_v9 = vld [vmem:[#allocation2 + $0x6c] ss:$16 sps:$4 sm:$0xff]  }
  0x2b   :  { %207 = vmatpush1.bf16.msra.mxu1 %v1814_v2  ;;  %v1817_v4 = vld [vmem:[#allocation2 + $0x40] ss:$16 sps:$4 sm:$0xff]   ;;  %v1818_v5 = vld [vmem:[#allocation2 + $0x24] ss:$16 sps:$4 sm:$0xff]   ;;  %v1836_v10 = vld [vmem:[#allocation5 + $0xac] ss:$12 sps:$4 sm:$0xff]  }
  0x2c   :  { %208 = vmatprep.subr.bf16.mxu1 %v1815_v3  ;;  %v1820_v6 = vld [vmem:[#allocation2 + $0x20] ss:$16 sps:$4 sm:$0xff]   ;;  %v1821_v7 = vld [vmem:[#allocation2 + $0x4] ss:$16 sps:$4 sm:$0xff]   ;;  %945 = vmatprep.subr.bf16.mxu0 %v1836_v10  ;;  %v1824_v14 = vld [vmem:[#allocation2 + $0x68] ss:$16 sps:$4 sm:$0xff]  }
  0x2d   :  { %v1823_v8 = vld [vmem:[#allocation2] ss:$16 sps:$4 sm:$0xff]   ;;  %v1838_v11 = vld [vmem:[#allocation5 + $0xa8] ss:$12 sps:$4 sm:$0xff]   ;;  %v1829_v16 = vld [vmem:[#allocation2 + $0x4c] ss:$16 sps:$4 sm:$0xff]  }
  0x2e   :  { %v75_v12 = vld [vmem:[%s2292_s0] sm:$0xf]  ;;  %946 = vmatpush1.bf16.msra.mxu0 %v1838_v11  ;;  %v1841_v15 = vld [vmem:[#allocation5 + $0x90] ss:$12 sps:$4 sm:$0xff]   ;;  %v1827_v18 = vld [vmem:[#allocation2 + $0x48] ss:$16 sps:$4 sm:$0xff]  }
  0x2f   :  { %209 = vmatpush1.bf16.msra.mxu1 %v1817_v4  ;;  %v1839_v13 = vld [vmem:[#allocation5 + $0x94] ss:$12 sps:$4 sm:$0xff]   ;;  %v1842_v17 = vld [vmem:[#allocation5 + $0x7c] ss:$12 sps:$4 sm:$0xff]   ;;  %v1844_v19 = vld [vmem:[#allocation5 + $0x78] ss:$12 sps:$4 sm:$0xff]  }
  0x30   :  { %210 = vmatprep.subr.bf16.mxu1 %v1818_v5  ;;  %947 = vmatprep.subr.bf16.mxu0 %v1839_v13  ;;  %v1845_v20 = vld [vmem:[#allocation5 + $0x64] ss:$12 sps:$4 sm:$0xff]   ;;  %v1832_v21 = vld [vmem:[#allocation2 + $0x2c] ss:$16 sps:$4 sm:$0xff]   ;;  %v1830_v23 = vld [vmem:[#allocation2 + $0x28] ss:$16 sps:$4 sm:$0xff]  }
  0x31   :  { %v1847_v22 = vld [vmem:[#allocation5 + $0x60] ss:$12 sps:$4 sm:$0xff]   ;;  %v1833_v26 = vld [vmem:[#allocation2 + $0x8] ss:$16 sps:$4 sm:$0xff]   ;;  %v1859_v30 = vld [vmem:[#allocation5 + $0x30] ss:$12 sps:$4 sm:$0xff]  }
  0x32   :  { %948 = vmatpush1.bf16.msra.mxu0 %v1841_v15  ;;  %v1848_v24 = vld [vmem:[#allocation5 + $0x4c] ss:$12 sps:$4 sm:$0xff]   ;;  %v1853_v27 = vld [vmem:[#allocation5 + $0x48] ss:$12 sps:$4 sm:$0xff]   ;;  %v1856_v34 = vld [vmem:[#allocation5 + $0x210] ss:$12 sps:$4 sm:$0xff]  }
  0x33   :  { %211 = vmatpush1.bf16.msra.mxu1 %v1820_v6  ;;  %949 = vmatprep.subr.bf16.mxu0 %v1842_v17  ;;  %v1835_v25 = vld [vmem:[#allocation2 + $0xc] ss:$16 sps:$4 sm:$0xff]   ;;  %v1854_v28 = vld [vmem:[#allocation5 + $0x34] ss:$12 sps:$4 sm:$0xff]   ;;  %v1865_v35 = vld [vmem:[#allocation5 + $0x18] ss:$12 sps:$4 sm:$0xff]  }
  0x34   :  { %212 = vmatprep.subr.bf16.mxu1 %v1821_v7  ;;  %v1852_v29 = vld [vmem:[#allocation5 + $0x22c] ss:$12 sps:$4 sm:$0xff]   ;;  %v1850_v31 = vld [vmem:[#allocation5 + $0x228] ss:$12 sps:$4 sm:$0xff]   ;;  %v1866_v36 = vld [vmem:[#allocation5 + $0x4] ss:$12 sps:$4 sm:$0xff]  }
  0x35   :  { %v1860_v32 = vld [vmem:[#allocation5 + $0x1c] ss:$12 sps:$4 sm:$0xff]   ;;  %v1858_v33 = vld [vmem:[#allocation5 + $0x214] ss:$12 sps:$4 sm:$0xff]   ;;  %v1862_v39 = vld [vmem:[#allocation5 + $0x1f8] ss:$12 sps:$4 sm:$0xff]  }
  0x36   :  { %950 = vmatpush1.bf16.msra.mxu0 %v1844_v19  ;;  %v1864_v37 = vld [vmem:[#allocation5 + $0x1fc] ss:$12 sps:$4 sm:$0xff]   ;;  %v1871_v38 = vld [vmem:[#allocation5] ss:$12 sps:$4 sm:$0xff]   ;;  %v1870_v41 = vld [vmem:[#allocation5 + $0x1e4] ss:$12 sps:$4 sm:$0xff]  }
  0x37   :  { %213 = vmatpush1.bf16.msra.mxu1 %v1823_v8  ;;  %951 = vmatprep.subr.bf16.mxu0 %v1845_v20  ;;  %v1872_v40 = vld [vmem:[#allocation5 + $0x16c] ss:$12 sps:$4 sm:$0xff]   ;;  %v1877_v44 = vld [vmem:[#allocation5 + $0x168] ss:$12 sps:$4 sm:$0xff]   ;;  %v1883_v46 = vld [vmem:[#allocation5 + $0x150] ss:$12 sps:$4 sm:$0xff]   ;;  %v94_v20 = vlaneseq }
  0x38   :  { %247 = vmatprep.subr.bf16.mxu1 %v1826_v9  ;;  %v1868_v42 = vld [vmem:[#allocation5 + $0x1e0] ss:$12 sps:$4 sm:$0xff]   ;;  %v1874_v47 = vld [vmem:[#allocation5 + $0x1c8] ss:$12 sps:$4 sm:$0xff]   ;;  %v1889_v50 = vld [vmem:[#allocation5 + $0x138] ss:$12 sps:$4 sm:$0xff]  }
  0x39   :  { %v1876_v43 = vld [vmem:[#allocation5 + $0x1cc] ss:$12 sps:$4 sm:$0xff]   ;;  %v1878_v45 = vld [vmem:[#allocation5 + $0x154] ss:$12 sps:$4 sm:$0xff]   ;;  %v1884_v48 = vld [vmem:[#allocation5 + $0x13c] ss:$12 sps:$4 sm:$0xff]  }
  0x3a   :  { %1543 = vmatmul.mubr.msk.bf16.vlgmr.msra.gmra.mxu1 %vm194_vm0, %v75_v12  ;;  %952 = vmatpush1.bf16.msra.mxu0 %v1847_v22  ;;  %v1882_v49 = vld [vmem:[#allocation5 + $0x1b4] ss:$12 sps:$4 sm:$0xff]   ;;  %v1880_v51 = vld [vmem:[#allocation5 + $0x1b0] ss:$12 sps:$4 sm:$0xff]   ;;  %v1886_v55 = vld [vmem:[#allocation5 + $0x198] ss:$12 sps:$4 sm:$0xff]  }
  0x3b   :  { %248 = vmatpush1.bf16.msra.mxu1 %v1824_v14  ;;  %271 = vmatprep.mubr.bf16.mxu1 %v2095_v0  ;;  %v1890_v52 = vld [vmem:[#allocation5 + $0x124] ss:$12 sps:$4 sm:$0xff]   ;;  %v1888_v53 = vld [vmem:[#allocation5 + $0x19c] ss:$12 sps:$4 sm:$0xff]   ;;  %v1895_v54 = vld [vmem:[#allocation5 + $0x120] ss:$12 sps:$4 sm:$0xff]  }
  0x3c   :  { %249 = vmatprep.subr.bf16.mxu1 %v1829_v16  ;;  %953 = vmatprep.subr.bf16.mxu0 %v1848_v24  ;;  %v1896_v56 = vld [vmem:[#allocation5 + $0x10c] ss:$12 sps:$4 sm:$0xff]   ;;  %v1894_v57 = vld [vmem:[#allocation5 + $0x184] ss:$12 sps:$4 sm:$0xff]   ;;  %v1901_v58 = vld [vmem:[#allocation5 + $0x108] ss:$12 sps:$4 sm:$0xff]  }
  0x3d   :  { %v1892_v59 = vld [vmem:[#allocation5 + $0x180] ss:$12 sps:$4 sm:$0xff]   ;;  %v1907_v62 = vld [vmem:[#allocation5 + $0xf0] ss:$12 sps:$4 sm:$0xff]   ;;  %v1898_v63 = vld [vmem:[#allocation5 + $0x2e8] ss:$12 sps:$4 sm:$0xff]  }
  0x3e   :  { %954 = vmatpush1.bf16.msra.mxu0 %v1853_v27  ;;  %v1902_v60 = vld [vmem:[#allocation5 + $0xf4] ss:$12 sps:$4 sm:$0xff]   ;;  %v1900_v61 = vld [vmem:[#allocation5 + $0x2ec] ss:$12 sps:$4 sm:$0xff]   ;;  %v1904_v1 = vld [vmem:[#allocation5 + $0x2d0] ss:$12 sps:$4 sm:$0xff]  }
  0x3f   :  { %250 = vmatpush1.bf16.msra.mxu1 %v1827_v18  ;;  %955 = vmatprep.subr.bf16.mxu0 %v1854_v28  ;;  %v1906_v0 = vld [vmem:[#allocation5 + $0x2d4] ss:$12 sps:$4 sm:$0xff]   ;;  %v1908_v2 = vld [vmem:[#allocation5 + $0xdc] ss:$12 sps:$4 sm:$0xff]   ;;  %v1910_v4 = vld [vmem:[#allocation5 + $0x2b8] ss:$12 sps:$4 sm:$0xff]  }
  0x40   :  { %251 = vmatprep.subr.bf16.mxu1 %v1832_v21  ;;  %v1912_v3 = vld [vmem:[#allocation5 + $0x2bc] ss:$12 sps:$4 sm:$0xff]   ;;  %v1913_v5 = vld [vmem:[#allocation5 + $0xd8] ss:$12 sps:$4 sm:$0xff]   ;;  %v1916_v8 = vld [vmem:[#allocation5 + $0x2a0] ss:$12 sps:$4 sm:$0xff]  }
  0x41   :  { %v1914_v6 = vld [vmem:[#allocation5 + $0xc4] ss:$12 sps:$4 sm:$0xff]   ;;  %v1919_v9 = vld [vmem:[#allocation5 + $0xc0] ss:$12 sps:$4 sm:$0xff]   ;;  %v1932_v15 = vld [vmem:[#allocation5 + $0x25c] ss:$12 sps:$4 sm:$0xff]  }
  0x42   :  { %956 = vmatpush1.bf16.msra.mxu0 %v1859_v30  ;;  %v1918_v7 = vld [vmem:[#allocation5 + $0x2a4] ss:$12 sps:$4 sm:$0xff]   ;;  %v1922_v10 = vld [vmem:[#allocation5 + $0x28c] ss:$12 sps:$4 sm:$0xff]   ;;  %v1927_v14 = vld [vmem:[#allocation5 + $0x274] ss:$12 sps:$4 sm:$0xff]  }
  0x43   :  { %252 = vmatpush1.bf16.msra.mxu1 %v1830_v23  ;;  %957 = vmatprep.subr.bf16.mxu0 %v1860_v32  ;;  %v1923_v11 = vld [vmem:[#allocation5 + $0x170] ss:$12 sps:$4 sm:$0xff]   ;;  %v1930_v16 = vld [vmem:[#allocation5 + $0x258] ss:$12 sps:$4 sm:$0xff]   ;;  %v1935_v18 = vld [vmem:[#allocation5 + $0x240] ss:$12 sps:$4 sm:$0xff]  }
  0x44   :  { %253 = vmatprep.subr.bf16.mxu1 %v1835_v25  ;;  %v1925_v13 = vld [vmem:[#allocation5 + $0x270] ss:$12 sps:$4 sm:$0xff]   ;;  %v2163_v21 = vshrl.u32 %v94_v20, 7  ;;  %v92_v23 = vld [vmem:[%s2294_s2] sm:$0xf]  ;;  %vm2097_vm1 = vmmov 0  }
  0x45   :  { %v1937_v17 = vld [vmem:[#allocation5 + $0x244] ss:$12 sps:$4 sm:$0xff]   ;;  %v1963_v20 = vld [vmem:[#allocation5 + $0x188] ss:$12 sps:$4 sm:$0xff]  }
  0x46   :  { %958 = vmatpush1.bf16.msra.mxu0 %v1865_v35  ;;  %v1941_v19 = vld [vmem:[#allocation5 + $0x2f0] ss:$12 sps:$4 sm:$0xff]   ;;  %v96_v22 = vsub.s32 0, %v2163_v21  ;;  %v100_v24 = vsub.s32 1, %v2163_v21 }
  0x47   :  { %254 = vmatpush1.bf16.msra.mxu1 %v1833_v26  ;;  %959 = vmatprep.subr.bf16.mxu0 %v1866_v36  ;;  %v1924_v36 = vld [vmem:[#allocation5 + $0xb0] ss:$12 sps:$4 sm:$0xff]  }
  0x48   :  { %986 = vmatprep.subr.bf16.mxu1 %v1852_v29  ;;  %v97_v25 = vrot.slane %v92_v23, %v96_v22  ;;  %v101_v26 = vrot.slane %v92_v23, %v100_v24 }
  0x4a   :  { %1544 = vmatmul.mubr.msk.bf16.vlgmr.msra.gmra.mxu1 %vm194_vm0, %v75_v12  ;;  %960 = vmatpush1.bf16.msra.mxu0 %v1871_v38  ;;  %v1920_v12 = vld [vmem:[#allocation5 + $0x288] ss:$12 sps:$4 sm:$0xff]   ;;  %v1928_v38 = vld [vmem:[#allocation5 + $0x158] ss:$12 sps:$4 sm:$0xff]  }
  0x4b   :  { %987 = vmatpush1.bf16.msra.mxu1 %v1850_v31  ;;  %961 = vmatprep.subr.bf16.mxu0 %v1872_v40  ;;  %v1929_v40 = vld [vmem:[#allocation5 + $0x98] ss:$12 sps:$4 sm:$0xff]  }
  0x4c   :  { %988 = vmatprep.subr.bf16.mxu1 %v1858_v33 }
  0x4e   :  { %962 = vmatpush2.bf16.msra.mxu0 %v1877_v44 }
  0x4f   :  { %989 = vmatpush1.bf16.msra.mxu1 %v1856_v34  ;;  %963 = vmatprep.subr.bf16.mxu0 %v1878_v45  ;;  %v1934_v45 = vld [vmem:[#allocation5 + $0x80] ss:$12 sps:$4 sm:$0xff]  }
  0x50   :  { %990 = vmatprep.subr.bf16.mxu1 %v1864_v37 }
  0x52   :  { %964 = vmatpush2.bf16.msra.mxu0 %v1883_v46 }
  0x53   :  { %991 = vmatpush1.bf16.msra.mxu1 %v1862_v39  ;;  %965 = vmatprep.subr.bf16.mxu0 %v1884_v48  ;;  %v104_v39 = vsub.s32 2, %v2163_v21 }
  0x54   :  { %992 = vmatprep.subr.bf16.mxu1 %v1870_v41  ;;  %v108_v41 = vsub.s32 3, %v2163_v21  ;;  %v1991_v21 = vld [vmem:[#allocation7 + $0x20] sm:$0xff]  }
  0x56   :  { %966 = vmatpush2.bf16.msra.mxu0 %v1889_v50  ;;  %v109_v44 = vrot.slane %v92_v23, %v108_v41  ;;  %v1983_v41 = vld [vmem:[%s2297_s5 + $0xa0] sm:$0xff]  }
  0x57   :  { %993 = vmatpush1.bf16.msra.mxu1 %v1868_v42  ;;  %967 = vmatprep.subr.bf16.mxu0 %v1890_v52  ;;  %v1933_v42 = vld [vmem:[#allocation5 + $0x140] ss:$12 sps:$4 sm:$0xff]  }
  0x58   :  { %994 = vmatprep.subr.bf16.mxu1 %v1876_v43  ;;  %v105_v43 = vrot.slane %v92_v23, %v104_v39  ;;  %v1968_v23 = vld [vmem:[%s2297_s5 + $0x68] sm:$0xff]  }
  0x5a   :  { %968 = vmatpush2.bf16.msra.mxu0 %v1895_v54  ;;  %v1940_v54 = vld [vmem:[#allocation5 + $0x110] ss:$12 sps:$4 sm:$0xff]  }
  0x5b   :  { %995 = vmatpush1.bf16.msra.mxu1 %v1874_v47  ;;  %969 = vmatprep.subr.bf16.mxu0 %v1896_v56  ;;  %v1938_v47 = vld [vmem:[#allocation5 + $0x128] ss:$12 sps:$4 sm:$0xff]  }
  0x5c   :  { %996 = vmatprep.subr.bf16.mxu1 %v1882_v49 }
  0x5e   :  { %970 = vmatpush2.bf16.msra.mxu0 %v1901_v58  ;;  %v1942_v58 = vld [vmem:[#allocation5 + $0x50] ss:$12 sps:$4 sm:$0xff]  }
  0x5f   :  { %997 = vmatpush1.bf16.msra.mxu1 %v1880_v51  ;;  %971 = vmatprep.subr.bf16.mxu0 %v1902_v60  ;;  %v1939_v51 = vld [vmem:[#allocation5 + $0x68] ss:$12 sps:$4 sm:$0xff]  }
  0x60   :  { %998 = vmatprep.subr.bf16.mxu1 %v1888_v53 }
  0x62   :  { %972 = vmatpush2.bf16.msra.mxu0 %v1907_v62  ;;  %v1945_v62 = vld [vmem:[#allocation5 + $0x2d8] ss:$12 sps:$4 sm:$0xff]  }
  0x63   :  { %999 = vmatpush1.bf16.msra.mxu1 %v1886_v55  ;;  %973 = vmatprep.subr.bf16.mxu0 %v1908_v2  ;;  %v1949_v2 = vld [vmem:[#allocation5 + $0x2c0] ss:$12 sps:$4 sm:$0xff]  }
  0x64   :  { %1000 = vmatprep.subr.bf16.mxu1 %v1894_v57 }
  0x66   :  { %974 = vmatpush2.bf16.msra.mxu0 %v1913_v5  ;;  %v1952_v5 = vld [vmem:[#allocation5 + $0xc8] ss:$12 sps:$4 sm:$0xff]  }
  0x67   :  { %1001 = vmatpush1.bf16.msra.mxu1 %v1892_v59  ;;  %975 = vmatprep.subr.bf16.mxu0 %v1914_v6  ;;  %v1943_v59 = vld [vmem:[#allocation5 + $0x230] ss:$12 sps:$4 sm:$0xff]   ;;  %v1953_v6 = vld [vmem:[#allocation5 + $0x2a8] ss:$12 sps:$4 sm:$0xff]  }
  0x68   :  { %1002 = vmatprep.subr.bf16.mxu1 %v1900_v61  ;;  %v1944_v61 = vld [vmem:[#allocation5 + $0xf8] ss:$12 sps:$4 sm:$0xff]  }
  0x6a   :  { %976 = vmatpush2.bf16.msra.mxu0 %v1919_v9  ;;  %v1956_v9 = vld [vmem:[#allocation5 + $0x290] ss:$12 sps:$4 sm:$0xff]  }
  0x6b   :  { %1003 = vmatpush2.bf16.msra.mxu1 %v1898_v63  ;;  %1675 = vmatprep.subr.bf16.mxu0 %v1923_v11  ;;  %v1946_v63 = vld [vmem:[#allocation5 + $0x38] ss:$12 sps:$4 sm:$0xff]   ;;  %v1957_v11 = vld [vmem:[#allocation5 + $0x1d0] ss:$12 sps:$4 sm:$0xff]  }
  0x6c   :  { %1004 = vmatprep.subr.bf16.mxu1 %v1906_v0  ;;  %v1947_v0 = vld [vmem:[#allocation5 + $0x218] ss:$12 sps:$4 sm:$0xff]  }
  0x6f   :  { %1005 = vmatpush2.bf16.msra.mxu1 %v1904_v1  ;;  %v1948_v1 = vld [vmem:[#allocation5 + $0xe0] ss:$12 sps:$4 sm:$0xff]  }
  0x70   :  { %1006 = vmatprep.subr.bf16.mxu1 %v1912_v3  ;;  %v1950_v3 = vld [vmem:[#allocation5 + $0x20] ss:$12 sps:$4 sm:$0xff]  }
  0x73   :  { %1007 = vmatpush2.bf16.msra.mxu1 %v1910_v4  ;;  %v1951_v4 = vld [vmem:[#allocation5 + $0x200] ss:$12 sps:$4 sm:$0xff]  }
  0x74   :  { %1008 = vmatprep.subr.bf16.mxu1 %v1918_v7  ;;  %v1954_v7 = vld [vmem:[#allocation5 + $0x8] ss:$12 sps:$4 sm:$0xff]  }
  0x77   :  { %1009 = vmatpush2.bf16.msra.mxu1 %v1916_v8  ;;  %v1955_v8 = vld [vmem:[#allocation5 + $0x1e8] ss:$12 sps:$4 sm:$0xff]  }
  0x78   :  { %1010 = vmatprep.subr.bf16.mxu1 %v1922_v10  ;;  %v1964_v10 = vld [vmem:[%s2297_s5 + $0x78] sm:$0xff]  }
  0x7b   :  { %1011 = vmatpush2.bf16.msra.mxu1 %v1920_v12  ;;  %v1965_v12 = vld [vmem:[%s2297_s5 + $0x38] sm:$0xff]  }
  0x7c   :  { %1012 = vmatprep.subr.bf16.mxu1 %v1927_v14  ;;  %v1966_v14 = vld [vmem:[%s2297_s5 + $0x70] sm:$0xff]  }
  0x7f   :  { %1013 = vmatpush2.bf16.msra.mxu1 %v1925_v13  ;;  %v1958_v13 = vld [vmem:[#allocation5 + $0x278] ss:$12 sps:$4 sm:$0xff]  }
  0x80   :  { %1014 = vmatprep.subr.bf16.mxu1 %v1932_v15  ;;  %v1959_v15 = vld [vmem:[#allocation5 + $0x1b8] ss:$12 sps:$4 sm:$0xff]  }
  0x83   :  { %1015 = vmatpush2.bf16.msra.mxu1 %v1930_v16  ;;  %v1967_v16 = vld [vmem:[%s2297_s5 + $0x30] sm:$0xff]  }
  0x84   :  { %1016 = vmatprep.subr.bf16.mxu1 %v1937_v17  ;;  %v1960_v17 = vld [vmem:[#allocation5 + $0x260] ss:$12 sps:$4 sm:$0xff]  }
  0x87   :  { %1017 = vmatpush2.bf16.msra.mxu1 %v1935_v18  ;;  %v1961_v18 = vld [vmem:[#allocation5 + $0x1a0] ss:$12 sps:$4 sm:$0xff]  }
  0x88   :  { %1697 = vmatprep.subr.bf16.mxu1 %v1941_v19  ;;  %v1962_v19 = vld [vmem:[#allocation5 + $0x248] ss:$12 sps:$4 sm:$0xff]  }
  0xfa   :  { %v232_v27 = vpop.f32.mrf.mxu1 }
  0xfb   :  { %v233_v28 = vadd.f32 %v232_v27, %v97_v25  ;;  %v1969_v25 = vld [vmem:[%s2297_s5 + $0x28] sm:$0xff]   ;;  %v1971_v27 = vld [vmem:[%s2297_s5 + $0x20] sm:$0xff]  }
  0xfc   :  { %v234_v29 = vpop.f32.mrf.mxu1 }
  0xfd   :  { %v235_v30 = vadd.f32 %v234_v29, %v101_v26  ;;  %v280_v31 = vmax.f32 %v233_v28, 0.0  ;;  %v1970_v26 = vld [vmem:[%s2297_s5 + $0x60] sm:$0xff]   ;;  %v1972_v28 = vld [vmem:[%s2297_s5 + $0x58] sm:$0xff]  }
  0xfe   :  { %v236_v32 = vpop.f32.mrf.mxu1  ;;  %v1973_v29 = vld [vmem:[%s2297_s5 + $0x18] sm:$0xff]  }
  0xff   :  { %v281_v33 = vmax.f32 %v235_v30, 0.0  ;;  %v2174_v37 = vpack.c.bf16 %v280_v31, %v280_v31  ;;  %v1974_v30 = vld [vmem:[%s2297_s5 + $0x50] sm:$0xff]   ;;  %v1976_v32 = vld [vmem:[%s2297_s5 + $0x48] sm:$0xff]  }
 0x100   :  { %v237_v34 = vpop.f32.mrf.mxu1  ;;  %v1975_v31 = vld [vmem:[%s2297_s5 + $0x10] sm:$0xff]  }
 0x101   :  { %v285_v35 = vpack.c.bf16 %v281_v33, %v281_v33  ;;  %v1977_v33 = vld [vmem:[%s2297_s5 + $0x8] sm:$0xff]   ;;  %v1978_v34 = vld [vmem:[%s2297_s5 + $0x40] sm:$0xff]  }
 0x103   :  { %977 = vmatprep.mubr.bf16.mxu0 %v285_v35 }
 0x104   :  { %978 = vmatmul.mubr.bf16.vlgmr.msra.gmra.mxu0 %v2174_v37 }
 0x105   :  { %1676 = vmatpush3.bf16.msra.mxu0 %v1924_v36  ;;  %1059 = vmatprep.mubr.bf16.mxu0 %v285_v35  ;;  %v1979_v35 = vld [vmem:[%s2297_s5] sm:$0xff]   ;;  %v1980_v36 = vld [vmem:[%s2297_s5 + $0xb8] sm:$0xff]  }
 0x106   :  { %1677 = vmatprep.subr.bf16.mxu0 %v1928_v38  ;;  %v1981_v38 = vld [vmem:[%s2297_s5 + $0xb0] sm:$0xff]  }
 0x109   :  { %1678 = vmatpush3.bf16.msra.mxu0 %v1929_v40  ;;  %v1982_v40 = vld [vmem:[%s2297_s5 + $0xa8] sm:$0xff]  }
 0x10a   :  { %v273_v46 = vpop.f32.mrf.mxu1  ;;  %1679 = vmatprep.subr.bf16.mxu0 %v1933_v42  ;;  %v1984_v42 = vld [vmem:[%s2297_s5 + $0x98] sm:$0xff]  }
 0x10b   :  { %v274_v48 = vadd.f32 %v273_v46, %v105_v43  ;;  %v1985_v43 = vld [vmem:[%s2297_s5 + $0x90] sm:$0xff]  }
 0x10c   :  { %v275_v49 = vpop.f32.mrf.mxu1 }
 0x10d   :  { %v276_v50 = vadd.f32 %v275_v49, %v109_v44  ;;  %1680 = vmatpush3.bf16.msra.mxu0 %v1934_v45  ;;  %v282_v52 = vmax.f32 %v274_v48, 0.0  ;;  %v1986_v44 = vld [vmem:[%s2297_s5 + $0x88] sm:$0xff]   ;;  %v1987_v45 = vld [vmem:[%s2297_s5 + $0x80] sm:$0xff]  }
 0x10e   :  { %v277_v53 = vpop.f32.mrf.mxu1  ;;  %1681 = vmatprep.subr.bf16.mxu0 %v1938_v47 }
 0x10f   :  { %v283_v55 = vmax.f32 %v276_v50, 0.0  ;;  %v286_v60 = vpack.c.bf16 %v282_v52, %v282_v52  ;;  %v416_v50 = vld [vmem:[%s2296_s4] sm:$0x7] }
 0x110   :  { %v278_v56 = vpop.f32.mrf.mxu1  ;;  %v425_v52 = vrot.slane %v416_v50, %v100_v24 }
 0x111   :  { %v287_v57 = vpack.c.bf16 %v283_v55, %v283_v55  ;;  %1682 = vmatpush3.bf16.msra.mxu0 %v1939_v51  ;;  %v421_v51 = vrot.slane %v416_v50, %v96_v22 }
 0x112   :  { %1683 = vmatprep.subr.bf16.mxu0 %v1940_v54 }
 0x113   :  { %1018 = vmatprep.mubr.bf16.mxu1 %v287_v57 }
 0x114   :  { %1019 = vmatmul.mubr.bf16.vlgmr.msra.gmra.mxu1 %v286_v60 }
 0x115   :  { %1684 = vmatpush3.bf16.msra.mxu0 %v1942_v58  ;;  %1698 = vmatpush3.bf16.msra.mxu1 %v1943_v59 }
 0x116   :  { %1099 = vmatprep.mubr.bf16.mxu1 %v287_v57  ;;  %1685 = vmatprep.subr.bf16.mxu0 %v1944_v61 }
 0x117   :  { %1699 = vmatprep.subr.bf16.mxu1 %v1945_v62 }
 0x119   :  { %1686 = vmatpush3.bf16.msra.mxu0 %v1946_v63  ;;  %1700 = vmatpush3.bf16.msra.mxu1 %v1947_v0 }
 0x11a   :  { %1687 = vmatprep.subr.bf16.mxu0 %v1948_v1  ;;  %1701 = vmatprep.subr.bf16.mxu1 %v1949_v2 }
 0x11d   :  { %1688 = vmatpush3.bf16.msra.mxu0 %v1950_v3  ;;  %1702 = vmatpush3.bf16.msra.mxu1 %v1951_v4  ;;  %v429_v3 = vrot.slane %v416_v50, %v104_v39  ;;  %v1992_v39 = vld [vmem:[#allocation7 + $0x18] sm:$0xff]  }
 0x11e   :  { %1689 = vmatprep.subr.bf16.mxu0 %v1952_v5  ;;  %1703 = vmatprep.subr.bf16.mxu1 %v1953_v6 }
 0x121   :  { %1690 = vmatpush3.bf16.msra.mxu0 %v1954_v7  ;;  %1704 = vmatpush3.bf16.msra.mxu1 %v1955_v8 }
 0x122   :  { %1705 = vmatprep.subr.bf16.mxu1 %v1956_v9  ;;  %1719 = vmatprep.subr.bf16.mxu0 %v1964_v10 }
 0x124   :  { %1060 = vmatmul.mubr.bf16.vlgmr.msra.gmra.mxu0 %v2174_v37  ;;  %v2096_v37 = vmov 0.0  }
 0x125   :  { %1706 = vmatpush3.bf16.msra.mxu1 %v1957_v11  ;;  %1720 = vmatpush3.bf16.msra.mxu0 %v1965_v12 }
 0x126   :  { %1707 = vmatprep.subr.bf16.mxu1 %v1958_v13  ;;  %1721 = vmatprep.subr.bf16.mxu0 %v1966_v14  ;;  %v1988_v14 = vld [vmem:[#allocation7 + $0x38] sm:$0xff]  }
 0x129   :  { %1708 = vmatpush3.bf16.msra.mxu1 %v1959_v15  ;;  %1722 = vmatpush3.bf16.msra.mxu0 %v1967_v16  ;;  %v1989_v15 = vld [vmem:[#allocation7 + $0x30] sm:$0xff]   ;;  %v1990_v16 = vld [vmem:[#allocation7 + $0x28] sm:$0xff]  }
 0x12a   :  { %1709 = vmatprep.subr.bf16.mxu1 %v1960_v17  ;;  %1723 = vmatprep.subr.bf16.mxu0 %v1968_v23  ;;  %v1993_v17 = vld [vmem:[#allocation7 + $0x10] sm:$0xff]  }
 0x12d   :  { %1710 = vmatpush3.bf16.msra.mxu1 %v1961_v18  ;;  %1724 = vmatpush3.bf16.msra.mxu0 %v1969_v25  ;;  %v1994_v18 = vld [vmem:[#allocation7 + $0x8] sm:$0xff]  }
 0x12e   :  { %1711 = vmatprep.subr.bf16.mxu1 %v1962_v19  ;;  %1725 = vmatprep.subr.bf16.mxu0 %v1970_v26  ;;  %v1995_v19 = vld [vmem:[#allocation7] sm:$0xff]  }
 0x131   :  { %1712 = vmatpush3.bf16.msra.mxu1 %v1963_v20  ;;  %1726 = vmatpush3.bf16.msra.mxu0 %v1971_v27 }
 0x132   :  { %1727 = vmatprep.subr.bf16.mxu0 %v1972_v28  ;;  %1759 = vmatprep.subr.bf16.mxu1 %v2096_v37  ;;  %v1641_v28 = vld [vmem:[%s2298_s6] ss:$0 sm:$0xff]  ;;  %s2098_s6 = smov [#allocation8]  }
 0x133   :  { %s1517_s2 = sshll.u32 %s2098_s6, 4  ;;  %s1518_s2 = int_to_ptr.vmem [resolvable:$true] %s1517_s2 }
 0x134   :  { %1100 = vmatmul.mubr.bf16.vlgmr.msra.gmra.mxu1 %v286_v60  ;;  %s2060_s30 = scalar_lea.vmem %s1518_s2, 128  ;;  %p2065_p2 = scmp.lt.s32.totalorder %s1518_s2, %s1518_s2 }
 0x135   :  { %1728 = vmatpush3.bf16.msra.mxu0 %v1973_v29  ;;  %1760 = vmatpush3.bf16.msra.mxu1 %v1980_v36  ;;  %p2061_p1 = scmp.ne.s32.totalorder %s1518_s2, %s2060_s30  ;;  %p2066_p3 = scmp.lt.s32.totalorder %s2060_s30, %s2060_s30 }
 0x136   :  { %1729 = vmatprep.subr.bf16.mxu0 %v1974_v30  ;;  %1761 = vmatprep.subr.bf16.mxu1 %v2096_v37 }
 0x137   :  { %1775 = vmatprep.mubr.msk.bf16.mxu1 %vm2097_vm1, %v2096_v37  ;;  %p2067_p4 = por %p2066_p3, %p2065_p2 }
 0x139   :  { %1730 = vmatpush3.bf16.msra.mxu0 %v1975_v31  ;;  %1762 = vmatpush3.bf16.msra.mxu1 %v1981_v38  ;;  %p2068_p5 = pnand %p2067_p4, %p2061_p1 }
 0x13a   :  { %1731 = vmatprep.subr.bf16.mxu0 %v1976_v32  ;;  %1763 = vmatprep.subr.bf16.mxu1 %v2096_v37 }
 0x13d   :  { %1732 = vmatpush3.bf16.msra.mxu0 %v1977_v33  ;;  %1764 = vmatpush3.bf16.msra.mxu1 %v1982_v40 }
 0x13e   :  { %1733 = vmatprep.subr.bf16.mxu0 %v1978_v34  ;;  %1765 = vmatprep.subr.bf16.mxu1 %v2096_v37 }
 0x141   :  { %1734 = vmatpush3.bf16.msra.mxu0 %v1979_v35  ;;  %1766 = vmatpush3.bf16.msra.mxu1 %v1983_v41 }
 0x142   :  { %1779 = vmatprep.subr.bf16.mxu0 %v2096_v37  ;;  %1767 = vmatprep.subr.bf16.mxu1 %v2096_v37 }
 0x145   :  { %1768 = vmatpush3.bf16.msra.mxu1 %v1984_v42 }
 0x146   :  { %1769 = vmatprep.subr.bf16.mxu1 %v2096_v37 }
 0x149   :  { %1770 = vmatpush3.bf16.msra.mxu1 %v1985_v43 }
 0x14a   :  { %1771 = vmatprep.subr.bf16.mxu1 %v2096_v37 }
 0x14d   :  { %1772 = vmatpush3.bf16.msra.mxu1 %v1986_v44 }
 0x14e   :  { %1773 = vmatprep.subr.bf16.mxu1 %v2096_v37 }
 0x151   :  { %1774 = vmatpush3.bf16.msra.mxu1 %v1987_v45 }
 0x1c4   :  { %v979_v46 = vpop.f32.mrf.mxu0 }
 0x1c5   :  { %v980_v53 = vadd.f32 %v979_v46, %v421_v51 }
 0x1c6   :  { %v981_v47 = vpop.f32.mrf.mxu0 }
 0x1c7   :  { %v982_v55 = vadd.f32 %v981_v47, %v425_v52 }
 0x1c8   :  { %v983_v48 = vpop.f32.mrf.mxu0 }
 0x1ca   :  { %v984_v49 = vpop.f32.mrf.mxu0 }
 0x1d4   :  { %v1020_v54 = vpop.f32.mrf.mxu1 }
 0x1d5   :  { %v1021_v56 = vadd.f32 %v1020_v54, %v980_v53 }
 0x1d6   :  { %v1022_v57 = vpop.f32.mrf.mxu1 }
 0x1d7   :  { %v1023_v58 = vadd.f32 %v1022_v57, %v982_v55  ;;  %v1107_v59 = vmax.f32 %v1021_v56, 0.0 }
 0x1d8   :  { %v1024_v60 = vpop.f32.mrf.mxu1 }
 0x1d9   :  { %v1108_v61 = vmax.f32 %v1023_v58, 0.0  ;;  %v1110_v0 = vpack.c.bf16 %v1107_v59, %v1107_v59 }
 0x1da   :  { %v1025_v62 = vpop.f32.mrf.mxu1 }
 0x1db   :  { %v1111_v63 = vpack.c.bf16 %v1108_v61, %v1108_v61 }
 0x1dd   :  { %1344 = vmatprep.mubr.bf16.mxu0 %v1111_v63 }
 0x1de   :  { %1345 = vmatmul.mubr.bf16.vlgmr.msra.gmra.mxu0 %v1110_v0 }
 0x1df   :  { %1795 = vmatprep.mubr.msk.bf16.mxu0 %vm2097_vm1, %v2096_v37  ;;  %1780 = vmatpush3.bf16.msra.mxu0 %v1988_v14 }
 0x1e0   :  { %1781 = vmatprep.subr.bf16.mxu0 %v2096_v37 }
 0x1e3   :  { %1782 = vmatpush3.bf16.msra.mxu0 %v1989_v15 }
 0x1e4   :  { %v1691_v22 = vpop.f32.mrf.mxu0  ;;  %1783 = vmatprep.subr.bf16.mxu0 %v2096_v37 }
 0x1e6   :  { %v1692_v1 = vpop.f32.mrf.mxu0 }
 0x1e7   :  { %v1693_v4 = vadd.f32 %v1692_v1, %v1691_v22  ;;  %1784 = vmatpush3.bf16.msra.mxu0 %v1990_v16 }
 0x1e8   :  { %v1694_v24 = vpop.f32.mrf.mxu0  ;;  %1785 = vmatprep.subr.bf16.mxu0 %v2096_v37 }
 0x1e9   :  { %v1062_v7 = vadd.f32 %v1693_v4, %v429_v3 }
 0x1ea   :  { %v1695_v2 = vpop.f32.mrf.mxu0 }
 0x1eb   :  { %1786 = vmatpush3.bf16.msra.mxu0 %v1991_v21 }
 0x1ec   :  { %1787 = vmatprep.subr.bf16.mxu0 %v2096_v37 }
 0x1ef   :  { %1788 = vmatpush3.bf16.msra.mxu0 %v1992_v39 }
 0x1f0   :  { %1789 = vmatprep.subr.bf16.mxu0 %v2096_v37 }
 0x1f3   :  { %1790 = vmatpush3.bf16.msra.mxu0 %v1993_v17 }
 0x1f4   :  { %v1713_v5 = vpop.f32.mrf.mxu1  ;;  %1791 = vmatprep.subr.bf16.mxu0 %v2096_v37 }
 0x1f6   :  { %v1714_v6 = vpop.f32.mrf.mxu1 }
 0x1f7   :  { %v1715_v8 = vadd.f32 %v1714_v6, %v1713_v5  ;;  %1792 = vmatpush3.bf16.msra.mxu0 %v1994_v18 }
 0x1f8   :  { %v1716_v9 = vpop.f32.mrf.mxu1  ;;  %1793 = vmatprep.subr.bf16.mxu0 %v2096_v37  ;;  %v1666_v37 = vld [vmem:[%s2300_s8] ss:$0 sm:$0xff] }
 0x1f9   :  { %v1102_v10 = vadd.f32 %v1715_v8, %v1062_v7 }
 0x1fa   :  { %v1717_v11 = vpop.f32.mrf.mxu1 }
 0x1fb   :  { %v1109_v12 = vmax.f32 %v1102_v10, 0.0  ;;  %1794 = vmatpush3.bf16.msra.mxu0 %v1995_v19 }
 0x1fd   :  { %v1112_v13 = vpack.c.bf16 %v1109_v12, %v1109_v12 }
 0x1ff   :  { %1776 = vmatmul.mubr.bf16.vlgmr.msra.gmra.mxu1 %v1112_v13 }
 0x29e   :  { %v1735_v20 = vpop.f32.mrf.mxu0 }
 0x2a0   :  { %v1736_v23 = vpop.f32.mrf.mxu0 }
 0x2a1   :  { %v1737_v27 = vadd.f32 %v1736_v23, %v1735_v20 }
 0x2a2   :  { %v1738_v25 = vpop.f32.mrf.mxu0 }
 0x2a3   :  { %v1347_v29 = vadd.f32 %v1737_v27, %v1641_v28 }
 0x2a4   :  { %v1739_v26 = vpop.f32.mrf.mxu0 }
 0x2bf   :  { %v1386_v30 = vpop.f32.mrf.mxu1 }
 0x2c0   :  { %v1387_v31 = vadd.f32 %v1386_v30, %v1347_v29 }
 0x2c1   :  { %v1777_v32 = vpop.f32.mrf.mxu1 }
 0x2c2   :  { %v1392_v33 = vmax.f32 %v1387_v31, 0.0 }
 0x2c3   :  { %v1389_v34 = vpop.f32.mrf.mxu1 }
 0x2c4   :  { %v1393_v35 = vpack.c.bf16 %v1392_v33, %v1392_v33 }
 0x2c5   :  { %v1778_v36 = vpop.f32.mrf.mxu1 }
 0x2c6   :  { %1796 = vmatmul.mubr.bf16.vlgmr.msra.gmra.mxu0 %v1393_v35 }
 0x386   :  { %v1499_v38 = vpop.f32.mrf.mxu0 }
 0x387   :  { %v1500_v40 = vadd.f32 %v1666_v37, %v1499_v38 }
 0x388   :  { %v1797_v41 = vpop.f32.mrf.mxu0 }
 0x389   :  { %v1505_v42 = vsub.f32 0.0, %v1500_v40 }
 0x38a   :  { %v1502_v43 = vpop.f32.mrf.mxu0 }
 0x38b   :  { %v1506_v44 = vmul.f32 1.442695, %v1505_v42 }
 0x38c   :  { %v1798_v45 = vpop.f32.mrf.mxu0 }
 0x38d   :  { %1996 = vpow2.f32 %v1506_v44 }
 0x39a   :  { %v1997_v46 = vpop.eup %1996 }
 0x39b   :  { %v1508_v47 = vadd.f32 1.0, %v1997_v46 }
 0x39d   :  { %1998 = vrcp.f32 %v1508_v47 }
 0x3aa   :  { %v1999_v48 = vpop.eup %1998 }
 0x3ab   :  { %1510 = vst [vmem:[#allocation8] sm:$0xff] %v1999_v48 }
 0x3ac   :  { %2071 = shalt.err (!%p2068_p5)
}
 0x3ad   :  { %1520 = dma.vmem_to_hbm [thread:$0]  %s1518_s2, 128, %s2301_s9, [#allocation4]  }
 0x3ae   :  { %2084 = dma.done.wait [#allocation4], 128  }
 0x3af   :  { %2085 = vsyncadd [#allocation4], 4294967168 }
 0x3b0   :  { %1524 = vsyncpa [#allocation3], 1 }
 0x3b1   :  { %1525 = vsyncpa [#allocation6], 1 }
 0x3b2   :  { %1526 = vsyncpa [#allocation4], 1 }

</bundles_post_ra>
